<compile_context>
chip_gen: v7x
topology: tpu7x:2x2x1
jax: 0.10.0
libtpu: 0.0.40
codegen_flags: <defaults>
</compile_context>

<pallas_src>
import jax
import jax.numpy as jnp
from jax.experimental import pallas as pl
from jax.experimental.pallas import tpu as pltpu

H, W, C = 224, 224, 2            # output_image: (224*224, 2)
ROWS = H * W                     # 50176
LANES = 128
DENSE_ROWS = (ROWS * C) // LANES  # 50176*2 / 128 = 784 (784 % 8 == 0)
BYTES = ROWS * C * 4             # ~400 KiB


def _copy_kernel(param_ref, out_ref):
    # Entire forward pass: identity copy of the parameter (lane-dense slab).
    out_ref[...] = param_ref[...]


def _copy_dense(param_dense):
    return pl.pallas_call(
        _copy_kernel,
        out_shape=jax.ShapeDtypeStruct((DENSE_ROWS, LANES), param_dense.dtype),
        grid=(1,),
        in_specs=[pl.BlockSpec((DENSE_ROWS, LANES), lambda i: (0, 0))],
        out_specs=pl.BlockSpec((DENSE_ROWS, LANES), lambda i: (0, 0)),
        input_output_aliases={0: 0},  # identity op: donate the input slab
        cost_estimate=pl.CostEstimate(
            flops=0, transcendentals=0, bytes_accessed=2 * BYTES),
        compiler_params=pltpu.CompilerParams(
            dimension_semantics=("arbitrary",)),
    )(param_dense)


@jax.jit
def simple_network_forward(x, output_image):
    """Pallas equivalent of SimpleNetwork.forward.

    `x` is accepted but unused (matches the PyTorch module).
    Returns the (50176, 2) parameter.
    """
    del x  # forward ignores its input
    dense = output_image.reshape(DENSE_ROWS, LANES)   # free contiguous view
    out_dense = _copy_dense(dense)
    return out_dense.reshape(ROWS, C)


if __name__ == "__main__":
    key = jax.random.PRNGKey(0)
    k_param, k_x = jax.random.split(key)

    # Deterministic stand-in for torch.rand(224*224, 2): uniform [0, 1).
    output_image = jax.random.uniform(k_param, (ROWS, C), dtype=jnp.float32)

    # Small NCHW-style input, ignored by forward (matches the reference).
    x = jax.random.normal(k_x, (2, 4, 16, 16), dtype=jnp.float32)

    out = simple_network_forward(x, output_image)
    out = jax.block_until_ready(out)

    assert out.shape == (ROWS, C), out.shape
    assert jnp.allclose(out, output_image), "kernel output != parameter"
    print("KERNEL_OK")
</pallas_src>

<mosaic_0001>
module attributes {stable_mosaic.version = 11 : i64} {
  func.func @_copy_kernel(%arg0: i32, %arg1: memref<784x128xf32, #tpu.memory_space<vmem>>, %arg2: memref<784x128xf32, #tpu.memory_space<vmem>>) attributes {dimension_semantics = [#tpu.dimension_semantics<arbitrary>], iteration_bounds = array<i64: 1>, scalar_prefetch = 0 : i64, scratch_operands = 0 : i64, tpu.core_type = #tpu.core_type<tc>, window_params = [{pipeline_mode = #tpu.pipeline_mode<synchronous>, transform_indices = @transform_0, window_bounds = array<i64: 784, 128>}, {pipeline_mode = #tpu.pipeline_mode<synchronous>, transform_indices = @transform_1, window_bounds = array<i64: 784, 128>}]} {
    %c0 = arith.constant 0 : index
    %c0_0 = arith.constant 0 : index
    %0 = vector.load %arg1[%c0, %c0_0] : memref<784x128xf32, #tpu.memory_space<vmem>>, vector<784x128xf32>
    %c0_1 = arith.constant 0 : index
    %c0_2 = arith.constant 0 : index
    %1 = vector.load %arg2[%c0_1, %c0_2] : memref<784x128xf32, #tpu.memory_space<vmem>>, vector<784x128xf32>
    tpu.vector_store %arg2[%c0_1, %c0_2], %0 {strides = array<i32>} : memref<784x128xf32, #tpu.memory_space<vmem>>, vector<784x128xf32>,
    return
  }
  func.func @transform_0(%arg0: i32) -> (i32, i32) {
    %c0_i32 = arith.constant 0 : i32
    %c0_i32_0 = arith.constant 0 : i32
    %c0_i32_1 = arith.constant 0 : i32
    return %c0_i32, %c0_i32_0 : i32, i32
  }
  func.func @transform_1(%arg0: i32) -> (i32, i32) {
    %c0_i32 = arith.constant 0 : i32
    %c0_i32_0 = arith.constant 0 : i32
    %c0_i32_1 = arith.constant 0 : i32
    return %c0_i32, %c0_i32_0 : i32, i32
  }
}

</mosaic_0001>

<bundles_post_ra>
// kernel: simple_network_forward.1
= control target key start
LH: loop header
LB: loop body
LE: loop exit
PB: predicated region body
PF: predicated region fallthrough
CT: control target
= control target key end

     0   :  { %s806_s0 = inlined_call_operand.vmem [shape: f32[784,128], index: 0, kind: input, shape index: {}, may-alias: {0,1}]   ;;  %s807_s1 = inlined_call_operand.vmem [shape: f32[784,128], index: 1, kind: output, shape index: {}, may-alias: {0,1}]  }
   0x1   :  { %v8_v0 = vld [vmem:[%s806_s0] sm:$0xff]  ;;  %v9_v1 = vld [vmem:[%s806_s0 + $0x8] sm:$0xff]  ;;  %v10_v2 = vld [vmem:[%s806_s0 + $0x10] sm:$0xff] }
   0x2   :  { %106 = vst [vmem:[%s807_s1] sm:$0xff] %v8_v0  ;;  %107 = vst [vmem:[%s807_s1 + $0x8] sm:$0xff] %v9_v1 }
   0x3   :  { %108 = vst [vmem:[%s807_s1 + $0x10] sm:$0xff] %v10_v2 }
   0xa   :  { %v11_v3 = vld [vmem:[%s806_s0 + $0x18] sm:$0xff]  ;;  %v12_v4 = vld [vmem:[%s806_s0 + $0x20] sm:$0xff]  ;;  %v13_v5 = vld [vmem:[%s806_s0 + $0x28] sm:$0xff] }
   0xb   :  { %109 = vst [vmem:[%s807_s1 + $0x18] sm:$0xff] %v11_v3  ;;  %110 = vst [vmem:[%s807_s1 + $0x20] sm:$0xff] %v12_v4 }
   0xc   :  { %111 = vst [vmem:[%s807_s1 + $0x28] sm:$0xff] %v13_v5 }
  0x13   :  { %v14_v6 = vld [vmem:[%s806_s0 + $0x30] sm:$0xff]  ;;  %v15_v7 = vld [vmem:[%s806_s0 + $0x38] sm:$0xff]  ;;  %v16_v8 = vld [vmem:[%s806_s0 + $0x40] sm:$0xff] }
  0x14   :  { %112 = vst [vmem:[%s807_s1 + $0x30] sm:$0xff] %v14_v6  ;;  %113 = vst [vmem:[%s807_s1 + $0x38] sm:$0xff] %v15_v7 }
  0x15   :  { %114 = vst [vmem:[%s807_s1 + $0x40] sm:$0xff] %v16_v8 }
  0x1c   :  { %v17_v9 = vld [vmem:[%s806_s0 + $0x48] sm:$0xff]  ;;  %v18_v10 = vld [vmem:[%s806_s0 + $0x50] sm:$0xff]  ;;  %v19_v11 = vld [vmem:[%s806_s0 + $0x58] sm:$0xff] }
  0x1d   :  { %115 = vst [vmem:[%s807_s1 + $0x48] sm:$0xff] %v17_v9  ;;  %116 = vst [vmem:[%s807_s1 + $0x50] sm:$0xff] %v18_v10 }
  0x1e   :  { %117 = vst [vmem:[%s807_s1 + $0x58] sm:$0xff] %v19_v11 }
  0x25   :  { %v20_v12 = vld [vmem:[%s806_s0 + $0x60] sm:$0xff]  ;;  %v21_v13 = vld [vmem:[%s806_s0 + $0x68] sm:$0xff]  ;;  %v22_v14 = vld [vmem:[%s806_s0 + $0x70] sm:$0xff] }
  0x26   :  { %118 = vst [vmem:[%s807_s1 + $0x60] sm:$0xff] %v20_v12  ;;  %119 = vst [vmem:[%s807_s1 + $0x68] sm:$0xff] %v21_v13 }
  0x27   :  { %120 = vst [vmem:[%s807_s1 + $0x70] sm:$0xff] %v22_v14 }
  0x2e   :  { %v23_v15 = vld [vmem:[%s806_s0 + $0x78] sm:$0xff]  ;;  %v24_v16 = vld [vmem:[%s806_s0 + $0x80] sm:$0xff]  ;;  %v25_v17 = vld [vmem:[%s806_s0 + $0x88] sm:$0xff] }
  0x2f   :  { %121 = vst [vmem:[%s807_s1 + $0x78] sm:$0xff] %v23_v15  ;;  %122 = vst [vmem:[%s807_s1 + $0x80] sm:$0xff] %v24_v16 }
  0x30   :  { %123 = vst [vmem:[%s807_s1 + $0x88] sm:$0xff] %v25_v17 }
  0x37   :  { %v26_v18 = vld [vmem:[%s806_s0 + $0x90] sm:$0xff]  ;;  %v27_v19 = vld [vmem:[%s806_s0 + $0x98] sm:$0xff]  ;;  %v28_v20 = vld [vmem:[%s806_s0 + $0xa0] sm:$0xff] }
  0x38   :  { %124 = vst [vmem:[%s807_s1 + $0x90] sm:$0xff] %v26_v18  ;;  %125 = vst [vmem:[%s807_s1 + $0x98] sm:$0xff] %v27_v19 }
  0x39   :  { %126 = vst [vmem:[%s807_s1 + $0xa0] sm:$0xff] %v28_v20 }
  0x40   :  { %v29_v21 = vld [vmem:[%s806_s0 + $0xa8] sm:$0xff]  ;;  %v30_v22 = vld [vmem:[%s806_s0 + $0xb0] sm:$0xff]  ;;  %v31_v23 = vld [vmem:[%s806_s0 + $0xb8] sm:$0xff] }
  0x41   :  { %127 = vst [vmem:[%s807_s1 + $0xa8] sm:$0xff] %v29_v21  ;;  %128 = vst [vmem:[%s807_s1 + $0xb0] sm:$0xff] %v30_v22 }
  0x42   :  { %129 = vst [vmem:[%s807_s1 + $0xb8] sm:$0xff] %v31_v23 }
  0x49   :  { %v32_v24 = vld [vmem:[%s806_s0 + $0xc0] sm:$0xff]  ;;  %v33_v25 = vld [vmem:[%s806_s0 + $0xc8] sm:$0xff]  ;;  %v34_v26 = vld [vmem:[%s806_s0 + $0xd0] sm:$0xff] }
  0x4a   :  { %130 = vst [vmem:[%s807_s1 + $0xc0] sm:$0xff] %v32_v24  ;;  %131 = vst [vmem:[%s807_s1 + $0xc8] sm:$0xff] %v33_v25 }
  0x4b   :  { %132 = vst [vmem:[%s807_s1 + $0xd0] sm:$0xff] %v34_v26 }
  0x52   :  { %v35_v27 = vld [vmem:[%s806_s0 + $0xd8] sm:$0xff]  ;;  %v36_v28 = vld [vmem:[%s806_s0 + $0xe0] sm:$0xff]  ;;  %v37_v29 = vld [vmem:[%s806_s0 + $0xe8] sm:$0xff] }
  0x53   :  { %133 = vst [vmem:[%s807_s1 + $0xd8] sm:$0xff] %v35_v27  ;;  %134 = vst [vmem:[%s807_s1 + $0xe0] sm:$0xff] %v36_v28 }
  0x54   :  { %135 = vst [vmem:[%s807_s1 + $0xe8] sm:$0xff] %v37_v29 }
  0x5b   :  { %v38_v30 = vld [vmem:[%s806_s0 + $0xf0] sm:$0xff]  ;;  %v39_v31 = vld [vmem:[%s806_s0 + $0xf8] sm:$0xff]  ;;  %v40_v32 = vld [vmem:[%s806_s0 + $0x100] sm:$0xff] }
  0x5c   :  { %136 = vst [vmem:[%s807_s1 + $0xf0] sm:$0xff] %v38_v30  ;;  %137 = vst [vmem:[%s807_s1 + $0xf8] sm:$0xff] %v39_v31 }
  0x5d   :  { %138 = vst [vmem:[%s807_s1 + $0x100] sm:$0xff] %v40_v32 }
  0x64   :  { %v41_v33 = vld [vmem:[%s806_s0 + $0x108] sm:$0xff]  ;;  %v42_v34 = vld [vmem:[%s806_s0 + $0x110] sm:$0xff]  ;;  %v43_v35 = vld [vmem:[%s806_s0 + $0x118] sm:$0xff] }
  0x65   :  { %139 = vst [vmem:[%s807_s1 + $0x108] sm:$0xff] %v41_v33  ;;  %140 = vst [vmem:[%s807_s1 + $0x110] sm:$0xff] %v42_v34 }
  0x66   :  { %141 = vst [vmem:[%s807_s1 + $0x118] sm:$0xff] %v43_v35 }
  0x6d   :  { %v44_v36 = vld [vmem:[%s806_s0 + $0x120] sm:$0xff]  ;;  %v45_v37 = vld [vmem:[%s806_s0 + $0x128] sm:$0xff]  ;;  %v46_v38 = vld [vmem:[%s806_s0 + $0x130] sm:$0xff] }
  0x6e   :  { %142 = vst [vmem:[%s807_s1 + $0x120] sm:$0xff] %v44_v36  ;;  %143 = vst [vmem:[%s807_s1 + $0x128] sm:$0xff] %v45_v37 }
  0x6f   :  { %144 = vst [vmem:[%s807_s1 + $0x130] sm:$0xff] %v46_v38 }
  0x76   :  { %v47_v39 = vld [vmem:[%s806_s0 + $0x138] sm:$0xff]  ;;  %v48_v40 = vld [vmem:[%s806_s0 + $0x140] sm:$0xff]  ;;  %v49_v41 = vld [vmem:[%s806_s0 + $0x148] sm:$0xff] }
  0x77   :  { %145 = vst [vmem:[%s807_s1 + $0x138] sm:$0xff] %v47_v39  ;;  %146 = vst [vmem:[%s807_s1 + $0x140] sm:$0xff] %v48_v40 }
  0x78   :  { %147 = vst [vmem:[%s807_s1 + $0x148] sm:$0xff] %v49_v41 }
  0x7f   :  { %v50_v42 = vld [vmem:[%s806_s0 + $0x150] sm:$0xff]  ;;  %v51_v43 = vld [vmem:[%s806_s0 + $0x158] sm:$0xff]  ;;  %v52_v44 = vld [vmem:[%s806_s0 + $0x160] sm:$0xff] }
  0x80   :  { %148 = vst [vmem:[%s807_s1 + $0x150] sm:$0xff] %v50_v42  ;;  %149 = vst [vmem:[%s807_s1 + $0x158] sm:$0xff] %v51_v43 }
  0x81   :  { %150 = vst [vmem:[%s807_s1 + $0x160] sm:$0xff] %v52_v44 }
  0x88   :  { %v53_v45 = vld [vmem:[%s806_s0 + $0x168] sm:$0xff]  ;;  %v54_v46 = vld [vmem:[%s806_s0 + $0x170] sm:$0xff]  ;;  %v55_v47 = vld [vmem:[%s806_s0 + $0x178] sm:$0xff] }
  0x89   :  { %151 = vst [vmem:[%s807_s1 + $0x168] sm:$0xff] %v53_v45  ;;  %152 = vst [vmem:[%s807_s1 + $0x170] sm:$0xff] %v54_v46 }
  0x8a   :  { %153 = vst [vmem:[%s807_s1 + $0x178] sm:$0xff] %v55_v47 }
  0x91   :  { %v56_v48 = vld [vmem:[%s806_s0 + $0x180] sm:$0xff]  ;;  %v57_v49 = vld [vmem:[%s806_s0 + $0x188] sm:$0xff]  ;;  %v58_v50 = vld [vmem:[%s806_s0 + $0x190] sm:$0xff] }
  0x92   :  { %154 = vst [vmem:[%s807_s1 + $0x180] sm:$0xff] %v56_v48  ;;  %155 = vst [vmem:[%s807_s1 + $0x188] sm:$0xff] %v57_v49 }
  0x93   :  { %156 = vst [vmem:[%s807_s1 + $0x190] sm:$0xff] %v58_v50 }
  0x9a   :  { %v59_v51 = vld [vmem:[%s806_s0 + $0x198] sm:$0xff]  ;;  %v60_v52 = vld [vmem:[%s806_s0 + $0x1a0] sm:$0xff]  ;;  %v61_v53 = vld [vmem:[%s806_s0 + $0x1a8] sm:$0xff] }
  0x9b   :  { %157 = vst [vmem:[%s807_s1 + $0x198] sm:$0xff] %v59_v51  ;;  %158 = vst [vmem:[%s807_s1 + $0x1a0] sm:$0xff] %v60_v52 }
  0x9c   :  { %159 = vst [vmem:[%s807_s1 + $0x1a8] sm:$0xff] %v61_v53 }
  0xa3   :  { %v62_v54 = vld [vmem:[%s806_s0 + $0x1b0] sm:$0xff]  ;;  %v63_v55 = vld [vmem:[%s806_s0 + $0x1b8] sm:$0xff]  ;;  %v64_v56 = vld [vmem:[%s806_s0 + $0x1c0] sm:$0xff] }
  0xa4   :  { %160 = vst [vmem:[%s807_s1 + $0x1b0] sm:$0xff] %v62_v54  ;;  %161 = vst [vmem:[%s807_s1 + $0x1b8] sm:$0xff] %v63_v55 }
  0xa5   :  { %162 = vst [vmem:[%s807_s1 + $0x1c0] sm:$0xff] %v64_v56 }
  0xac   :  { %v65_v57 = vld [vmem:[%s806_s0 + $0x1c8] sm:$0xff]  ;;  %v66_v58 = vld [vmem:[%s806_s0 + $0x1d0] sm:$0xff]  ;;  %v67_v59 = vld [vmem:[%s806_s0 + $0x1d8] sm:$0xff] }
  0xad   :  { %163 = vst [vmem:[%s807_s1 + $0x1c8] sm:$0xff] %v65_v57  ;;  %164 = vst [vmem:[%s807_s1 + $0x1d0] sm:$0xff] %v66_v58 }
  0xae   :  { %165 = vst [vmem:[%s807_s1 + $0x1d8] sm:$0xff] %v67_v59 }
  0xb5   :  { %v68_v60 = vld [vmem:[%s806_s0 + $0x1e0] sm:$0xff]  ;;  %v69_v61 = vld [vmem:[%s806_s0 + $0x1e8] sm:$0xff]  ;;  %v70_v62 = vld [vmem:[%s806_s0 + $0x1f0] sm:$0xff] }
  0xb6   :  { %166 = vst [vmem:[%s807_s1 + $0x1e0] sm:$0xff] %v68_v60  ;;  %167 = vst [vmem:[%s807_s1 + $0x1e8] sm:$0xff] %v69_v61 }
  0xb7   :  { %168 = vst [vmem:[%s807_s1 + $0x1f0] sm:$0xff] %v70_v62 }
  0xbe   :  { %v71_v63 = vld [vmem:[%s806_s0 + $0x1f8] sm:$0xff]  ;;  %v72_v0 = vld [vmem:[%s806_s0 + $0x200] sm:$0xff]  ;;  %v73_v1 = vld [vmem:[%s806_s0 + $0x208] sm:$0xff] }
  0xbf   :  { %169 = vst [vmem:[%s807_s1 + $0x1f8] sm:$0xff] %v71_v63  ;;  %170 = vst [vmem:[%s807_s1 + $0x200] sm:$0xff] %v72_v0 }
  0xc0   :  { %171 = vst [vmem:[%s807_s1 + $0x208] sm:$0xff] %v73_v1 }
  0xc7   :  { %v74_v2 = vld [vmem:[%s806_s0 + $0x210] sm:$0xff]  ;;  %v75_v3 = vld [vmem:[%s806_s0 + $0x218] sm:$0xff]  ;;  %v76_v4 = vld [vmem:[%s806_s0 + $0x220] sm:$0xff] }
  0xc8   :  { %172 = vst [vmem:[%s807_s1 + $0x210] sm:$0xff] %v74_v2  ;;  %173 = vst [vmem:[%s807_s1 + $0x218] sm:$0xff] %v75_v3 }
  0xc9   :  { %174 = vst [vmem:[%s807_s1 + $0x220] sm:$0xff] %v76_v4 }
  0xd0   :  { %v77_v5 = vld [vmem:[%s806_s0 + $0x228] sm:$0xff]  ;;  %v78_v6 = vld [vmem:[%s806_s0 + $0x230] sm:$0xff]  ;;  %v79_v7 = vld [vmem:[%s806_s0 + $0x238] sm:$0xff] }
  0xd1   :  { %175 = vst [vmem:[%s807_s1 + $0x228] sm:$0xff] %v77_v5  ;;  %176 = vst [vmem:[%s807_s1 + $0x230] sm:$0xff] %v78_v6 }
  0xd2   :  { %177 = vst [vmem:[%s807_s1 + $0x238] sm:$0xff] %v79_v7 }
  0xd9   :  { %v80_v8 = vld [vmem:[%s806_s0 + $0x240] sm:$0xff]  ;;  %v81_v9 = vld [vmem:[%s806_s0 + $0x248] sm:$0xff]  ;;  %v82_v10 = vld [vmem:[%s806_s0 + $0x250] sm:$0xff] }
  0xda   :  { %178 = vst [vmem:[%s807_s1 + $0x240] sm:$0xff] %v80_v8  ;;  %179 = vst [vmem:[%s807_s1 + $0x248] sm:$0xff] %v81_v9 }
  0xdb   :  { %180 = vst [vmem:[%s807_s1 + $0x250] sm:$0xff] %v82_v10 }
  0xe2   :  { %v83_v11 = vld [vmem:[%s806_s0 + $0x258] sm:$0xff]  ;;  %v84_v12 = vld [vmem:[%s806_s0 + $0x260] sm:$0xff]  ;;  %v85_v13 = vld [vmem:[%s806_s0 + $0x268] sm:$0xff] }
  0xe3   :  { %181 = vst [vmem:[%s807_s1 + $0x258] sm:$0xff] %v83_v11  ;;  %182 = vst [vmem:[%s807_s1 + $0x260] sm:$0xff] %v84_v12 }
  0xe4   :  { %183 = vst [vmem:[%s807_s1 + $0x268] sm:$0xff] %v85_v13 }
  0xeb   :  { %v86_v14 = vld [vmem:[%s806_s0 + $0x270] sm:$0xff]  ;;  %v87_v15 = vld [vmem:[%s806_s0 + $0x278] sm:$0xff]  ;;  %v88_v16 = vld [vmem:[%s806_s0 + $0x280] sm:$0xff] }
  0xec   :  { %184 = vst [vmem:[%s807_s1 + $0x270] sm:$0xff] %v86_v14  ;;  %185 = vst [vmem:[%s807_s1 + $0x278] sm:$0xff] %v87_v15 }
  0xed   :  { %186 = vst [vmem:[%s807_s1 + $0x280] sm:$0xff] %v88_v16 }
  0xf4   :  { %v89_v17 = vld [vmem:[%s806_s0 + $0x288] sm:$0xff]  ;;  %v90_v18 = vld [vmem:[%s806_s0 + $0x290] sm:$0xff]  ;;  %v91_v19 = vld [vmem:[%s806_s0 + $0x298] sm:$0xff] }
  0xf5   :  { %187 = vst [vmem:[%s807_s1 + $0x288] sm:$0xff] %v89_v17  ;;  %188 = vst [vmem:[%s807_s1 + $0x290] sm:$0xff] %v90_v18 }
  0xf6   :  { %189 = vst [vmem:[%s807_s1 + $0x298] sm:$0xff] %v91_v19 }
  0xfd   :  { %v92_v20 = vld [vmem:[%s806_s0 + $0x2a0] sm:$0xff]  ;;  %v93_v21 = vld [vmem:[%s806_s0 + $0x2a8] sm:$0xff]  ;;  %v94_v22 = vld [vmem:[%s806_s0 + $0x2b0] sm:$0xff] }
  0xfe   :  { %190 = vst [vmem:[%s807_s1 + $0x2a0] sm:$0xff] %v92_v20  ;;  %191 = vst [vmem:[%s807_s1 + $0x2a8] sm:$0xff] %v93_v21 }
  0xff   :  { %192 = vst [vmem:[%s807_s1 + $0x2b0] sm:$0xff] %v94_v22 }
 0x106   :  { %v95_v23 = vld [vmem:[%s806_s0 + $0x2b8] sm:$0xff]  ;;  %v96_v24 = vld [vmem:[%s806_s0 + $0x2c0] sm:$0xff]  ;;  %v97_v25 = vld [vmem:[%s806_s0 + $0x2c8] sm:$0xff] }
 0x107   :  { %193 = vst [vmem:[%s807_s1 + $0x2b8] sm:$0xff] %v95_v23  ;;  %194 = vst [vmem:[%s807_s1 + $0x2c0] sm:$0xff] %v96_v24 }
 0x108   :  { %195 = vst [vmem:[%s807_s1 + $0x2c8] sm:$0xff] %v97_v25 }
 0x10f   :  { %v98_v26 = vld [vmem:[%s806_s0 + $0x2d0] sm:$0xff]  ;;  %v99_v27 = vld [vmem:[%s806_s0 + $0x2d8] sm:$0xff]  ;;  %v100_v28 = vld [vmem:[%s806_s0 + $0x2e0] sm:$0xff] }
 0x110   :  { %196 = vst [vmem:[%s807_s1 + $0x2d0] sm:$0xff] %v98_v26  ;;  %197 = vst [vmem:[%s807_s1 + $0x2d8] sm:$0xff] %v99_v27 }
 0x111   :  { %198 = vst [vmem:[%s807_s1 + $0x2e0] sm:$0xff] %v100_v28 }
 0x118   :  { %v101_v29 = vld [vmem:[%s806_s0 + $0x2e8] sm:$0xff]  ;;  %v102_v30 = vld [vmem:[%s806_s0 + $0x2f0] sm:$0xff]  ;;  %v103_v31 = vld [vmem:[%s806_s0 + $0x2f8] sm:$0xff] }
 0x119   :  { %199 = vst [vmem:[%s807_s1 + $0x2e8] sm:$0xff] %v101_v29  ;;  %200 = vst [vmem:[%s807_s1 + $0x2f0] sm:$0xff] %v102_v30 }
 0x11a   :  { %201 = vst [vmem:[%s807_s1 + $0x2f8] sm:$0xff] %v103_v31 }
 0x121   :  { %v104_v32 = vld [vmem:[%s806_s0 + $0x300] sm:$0xff]  ;;  %v105_v33 = vld [vmem:[%s806_s0 + $0x308] sm:$0xff] }
 0x122   :  { %202 = vst [vmem:[%s807_s1 + $0x300] sm:$0xff] %v104_v32  ;;  %203 = vst [vmem:[%s807_s1 + $0x308] sm:$0xff] %v105_v33 }

</bundles_post_ra>
